<compile_context>
chip_gen: v6e
topology: v6e:2x2x1
jax: 0.10.0
libtpu: 0.0.40
codegen_flags: <defaults>
</compile_context>

<pallas_src>
import numpy as np
import jax
import jax.numpy as jnp
from jax.experimental import pallas as pl
from jax.experimental.pallas import tpu as pltpu

EPS = 1e-8
INV_LN2 = 1.4426950408889634  # 1/ln(2): log2(x) = log(x) * INV_LN2


def _round_up(x, m):
    return ((x + m - 1) // m) * m


def _hann_window(n_fft):
    # torch.hann_window(n_fft, periodic=True)
    k = np.arange(n_fft)
    return (0.5 * (1.0 - np.cos(2.0 * np.pi * k / n_fft))).astype(np.float32)


def _dft_basis(n_fft, nf_pad):
    """Windowed real/imag DFT basis, concatenated [cos | sin], zero-padded on the
    frequency axis to nf_pad (multiple of 128).  Zero columns give mag == 0 for BOTH
    pred and target, so padded lanes contribute exactly 0 to both loss terms."""
    win = _hann_window(n_fft)
    n_freq = n_fft // 2 + 1
    k = np.arange(n_fft)[:, None].astype(np.float64)
    f = np.arange(n_freq)[None, :].astype(np.float64)
    ang = 2.0 * np.pi * k * f / n_fft
    cos_m = np.zeros((n_fft, nf_pad), np.float32)
    sin_m = np.zeros((n_fft, nf_pad), np.float32)
    cos_m[:, :n_freq] = (np.cos(ang) * win[:, None]).astype(np.float32)
    sin_m[:, :n_freq] = (np.sin(ang) * win[:, None]).astype(np.float32)
    return jnp.asarray(np.concatenate([cos_m, sin_m], axis=1))  # (n_fft, 2*nf_pad)


def _frame(x, n_fft, hop):
    """x: (B, T) -> (B*n_frames, n_fft). Matches torchaudio Spectrogram defaults
    (center=True, pad_mode='reflect', win_length=n_fft, hop_length=hop)."""
    # TODO(synk): with overlap=0.75 this gather materializes ~4x the signal in HBM; a
    # strided manual-DMA framing (memory_space=pl.ANY + per-tile window copies inside
    # the kernel) would cut that HBM traffic for the small-n_fft, mem-bound scales.
    pad = n_fft // 2
    xp = jnp.pad(x, ((0, 0), (pad, pad)), mode="reflect")
    n_frames = 1 + (xp.shape[1] - n_fft) // hop
    idx = jnp.arange(n_frames)[:, None] * hop + jnp.arange(n_fft)[None, :]
    frames = xp[:, idx]  # (B, n_frames, n_fft)
    return frames.reshape(-1, n_fft).astype(jnp.float32)


def _sss_kernel(fp_ref, ft_ref, basis_ref, acc_ref):
    """One M-tile of the single-scale spectral loss.

    fp_ref, ft_ref : (block_m, n_fft)   framed pred / target tile (VMEM, pipelined)
    basis_ref      : (n_fft, 2*nf_pad)  resident windowed [cos | sin] DFT basis (VMEM)
    acc_ref        : (1, 16, nf_pad)    per-split output accumulator;
                     rows 0:8  -> partial sums of |S_p - S_t|
                     rows 8:16 -> partial sums of |log2(S_t+eps) - log2(S_p+eps)|
    """
    i = pl.program_id(1)

    @pl.when(i == 0)
    def _init():
        acc_ref[...] = jnp.zeros_like(acc_ref)

    bm = fp_ref.shape[0]
    nf_pad = basis_ref.shape[1] // 2

    # One fused MXU matmul: [pred_tile ; target_tile] @ [cos | sin]
    lhs = jnp.concatenate([fp_ref[...], ft_ref[...]], axis=0)              # (2*bm, n_fft)
    spec = jnp.dot(lhs, basis_ref[...], preferred_element_type=jnp.float32)

    re_p, im_p = spec[:bm, :nf_pad], spec[:bm, nf_pad:]
    re_t, im_t = spec[bm:, :nf_pad], spec[bm:, nf_pad:]

    mag_p = jnp.sqrt(re_p * re_p + im_p * im_p)   # power=1 magnitude spectrogram
    mag_t = jnp.sqrt(re_t * re_t + im_t * im_t)

    lin = jnp.abs(mag_p - mag_t)
    logd = jnp.abs(jnp.log(mag_t + EPS) - jnp.log(mag_p + EPS)) * INV_LN2

    # Reduce only over sublane groups per step (pure VPU adds, layout-preserving
    # reshape); the single cross-lane reduce is done once in the JAX wrapper.
    acc_ref[0, :8, :] += lin.reshape(bm // 8, 8, nf_pad).sum(axis=0)
    acc_ref[0, 8:, :] += logd.reshape(bm // 8, 8, nf_pad).sum(axis=0)


def sss_loss(pred, target, n_fft, hop, alpha=1.0, max_block_m=256, n_splits=2):
    n_freq = n_fft // 2 + 1
    nf_pad = _round_up(n_freq, 128)
    basis = _dft_basis(n_fft, nf_pad)

    fp = _frame(pred, n_fft, hop)
    ft = _frame(target, n_fft, hop)
    m_real = fp.shape[0]

    # Tile the frame dimension; split tiles across 2 "parallel" grid slots (2 TCs on v7x).
    per_split = -(-m_real // n_splits)
    block_m = min(max_block_m, _round_up(per_split, 8))
    tiles_per_split = -(-per_split // block_m)
    m_pad = n_splits * tiles_per_split * block_m
    if m_pad != m_real:
        # Zero frames -> zero magnitudes for BOTH pred and target -> contribute 0.
        fp = jnp.pad(fp, ((0, m_pad - m_real), (0, 0)))
        ft = jnp.pad(ft, ((0, m_pad - m_real), (0, 0)))

    frame_spec = pl.BlockSpec((block_m, n_fft),
                              lambda p, i: (p * tiles_per_split + i, 0))

    acc = pl.pallas_call(
        _sss_kernel,
        out_shape=jax.ShapeDtypeStruct((n_splits, 16, nf_pad), jnp.float32),
        grid_spec=pltpu.PrefetchScalarGridSpec(
            num_scalar_prefetch=0,
            grid=(n_splits, tiles_per_split),
            in_specs=[
                frame_spec,                                          # pred frame tiles
                frame_spec,                                          # target frame tiles
                pl.BlockSpec(memory_space=pltpu.MemorySpace.VMEM),   # resident basis
            ],
            out_specs=pl.BlockSpec((1, 16, nf_pad), lambda p, i: (p, 0, 0)),
        ),
        compiler_params=pltpu.CompilerParams(
            dimension_semantics=("parallel", "arbitrary"),
            vmem_limit_bytes=64 * 1024 * 1024,   # fits v7x; plenty for v5e/v6e
        ),
        cost_estimate=pl.CostEstimate(
            flops=2 * (2 * m_pad) * n_fft * (2 * nf_pad),
            transcendentals=2 * m_pad * nf_pad,
            bytes_accessed=4 * (2 * m_pad * n_fft + int(basis.size)
                                + n_splits * 16 * nf_pad),
        ),
    )(fp, ft, basis)

    lin_sum = jnp.sum(acc[:, :8, :])
    log_sum = jnp.sum(acc[:, 8:, :])
    count = jnp.float32(m_real * n_freq)  # F.l1_loss mean over real spectrogram elements
    return (lin_sum + alpha * log_sum) / count


def mss_loss(x_pred, x_true, n_ffts, alpha=1.0, ratio=1.0, overlap=0.75):
    total = jnp.float32(0.0)
    for n_fft in n_ffts:
        hop = int(n_fft - n_fft * overlap)
        total = total + sss_loss(x_pred, x_true, n_fft, hop, alpha=alpha)
    return ratio * total


def _mss_loss_ref(x_pred, x_true, n_ffts, alpha=1.0, ratio=1.0, overlap=0.75):
    """Pure-JAX reference (same framing / basis), for validation."""
    total = jnp.float32(0.0)
    for n_fft in n_ffts:
        hop = int(n_fft - n_fft * overlap)
        n_freq = n_fft // 2 + 1
        nf_pad = _round_up(n_freq, 128)
        basis = _dft_basis(n_fft, nf_pad)

        def spec_mag(x):
            fr = _frame(x, n_fft, hop)
            s = fr @ basis
            re, im = s[:, :nf_pad], s[:, nf_pad:]
            return jnp.sqrt(re * re + im * im)[:, :n_freq]

        mp, mt = spec_mag(x_pred), spec_mag(x_true)
        lin = jnp.mean(jnp.abs(mp - mt))
        logd = jnp.mean(jnp.abs(jnp.log(mt + EPS) - jnp.log(mp + EPS))) * INV_LN2
        total = total + lin + alpha * logd
    return ratio * total


if __name__ == "__main__":
    key = jax.random.PRNGKey(0)
    k1, k2 = jax.random.split(key)
    batch, time = 2, 256
    x_pred = jax.random.normal(k1, (batch, time), dtype=jnp.float32)
    x_true = jax.random.normal(k2, (batch, time), dtype=jnp.float32)

    # Small-scale analogue of MSSLoss([2048, 1024, 512, 256], overlap=0.75)
    n_ffts = [64, 32]
    loss = mss_loss(x_pred, x_true, n_ffts, alpha=1.0, ratio=1.0, overlap=0.75)
    loss = jax.block_until_ready(loss)
    assert jnp.isfinite(loss), "loss is not finite"

    ref = jax.block_until_ready(_mss_loss_ref(x_pred, x_true, n_ffts))
    assert jnp.allclose(loss, ref, rtol=1e-3, atol=1e-3), (float(loss), float(ref))
    print("KERNEL_OK")
</pallas_src>

<mosaic_0001>
module attributes {stable_mosaic.version = 11 : i64} {
  func.func @_sss_kernel(%arg0: i32, %arg1: i32, %arg2: memref<24x64xf32, #tpu.memory_space<vmem>>, %arg3: memref<24x64xf32, #tpu.memory_space<vmem>>, %arg4: memref<64x256xf32, #tpu.memory_space<vmem>>, %arg5: memref<1x16x128xf32, #tpu.memory_space<vmem>>) attributes {dimension_semantics = [#tpu.dimension_semantics<parallel>, #tpu.dimension_semantics<arbitrary>], iteration_bounds = array<i64: 2, 1>, scalar_prefetch = 0 : i64, scratch_operands = 0 : i64, tpu.core_type = #tpu.core_type<tc>, window_params = [{transform_indices = @transform_0, window_bounds = array<i64: 24, 64>}, {transform_indices = @transform_1, window_bounds = array<i64: 24, 64>}, {pipeline_mode = #tpu.pipeline_mode<synchronous>, transform_indices = @transform_2, window_bounds = array<i64: 64, 256>}, {transform_indices = @transform_3, window_bounds = array<i64: 1, 16, 128>}]} {
    %c0_i32 = arith.constant 0 : i32
    %0 = arith.cmpi eq, %arg1, %c0_i32 : i32
    %1 = arith.extui %0 : i1 to i32
    %c0_i32_0 = arith.constant 0 : i32
    %2 = arith.cmpi ne, %1, %c0_i32_0 : i32
    scf.if %2 {
      %cst_22 = arith.constant 0.000000e+00 : f32
      %48 = vector.broadcast %cst_22 : f32 to vector<1x16x128xf32>
      %c0_23 = arith.constant 0 : index
      %c0_24 = arith.constant 0 : index
      %c0_25 = arith.constant 0 : index
      %49 = vector.load %arg5[%c0_23, %c0_24, %c0_25] : memref<1x16x128xf32, #tpu.memory_space<vmem>>, vector<1x16x128xf32>
      tpu.vector_store %arg5[%c0_23, %c0_24, %c0_25], %48 {strides = array<i32>} : memref<1x16x128xf32, #tpu.memory_space<vmem>>, vector<1x16x128xf32>,
    } else {
    }
    %c0 = arith.constant 0 : index
    %c0_1 = arith.constant 0 : index
    %3 = vector.load %arg2[%c0, %c0_1] : memref<24x64xf32, #tpu.memory_space<vmem>>, vector<24x64xf32>
    %c0_2 = arith.constant 0 : index
    %c0_3 = arith.constant 0 : index
    %4 = vector.load %arg3[%c0_2, %c0_3] : memref<24x64xf32, #tpu.memory_space<vmem>>, vector<24x64xf32>
    %5 = tpu.concatenate %3, %4 in 0 : vector<24x64xf32>, vector<24x64xf32> -> vector<48x64xf32>
    %c0_4 = arith.constant 0 : index
    %c0_5 = arith.constant 0 : index
    %6 = vector.load %arg4[%c0_4, %c0_5] : memref<64x256xf32, #tpu.memory_space<vmem>>, vector<64x256xf32>
    %cst = arith.constant dense<0.000000e+00> : vector<48x256xf32>
    %7 = tpu.matmul %5, %6, %cst {dimension_numbers = #tpu.dot_dimension_numbers<[1], [0], [0], [1], [0, 0, 1, 1], [], []>} : vector<48x64xf32>, vector<64x256xf32>, vector<48x256xf32> -> vector<48x256xf32>
    %8 = vector.extract_strided_slice %7 {offsets = [0, 0], sizes = [24, 128], strides = [1, 1]} : vector<48x256xf32> to vector<24x128xf32>
    %9 = vector.extract_strided_slice %7 {offsets = [0, 128], sizes = [24, 128], strides = [1, 1]} : vector<48x256xf32> to vector<24x128xf32>
    %10 = vector.extract_strided_slice %7 {offsets = [24, 0], sizes = [24, 128], strides = [1, 1]} : vector<48x256xf32> to vector<24x128xf32>
    %11 = vector.extract_strided_slice %7 {offsets = [24, 128], sizes = [24, 128], strides = [1, 1]} : vector<48x256xf32> to vector<24x128xf32>
    %12 = arith.mulf %8, %8 : vector<24x128xf32>
    %13 = arith.mulf %9, %9 : vector<24x128xf32>
    %14 = arith.addf %12, %13 : vector<24x128xf32>
    %15 = math.sqrt %14 : vector<24x128xf32>
    %16 = arith.mulf %10, %10 : vector<24x128xf32>
    %17 = arith.mulf %11, %11 : vector<24x128xf32>
    %18 = arith.addf %16, %17 : vector<24x128xf32>
    %19 = math.sqrt %18 : vector<24x128xf32>
    %20 = arith.subf %15, %19 : vector<24x128xf32>
    %21 = math.absf %20 : vector<24x128xf32>
    %cst_6 = arith.constant 9.99999993E-9 : f32
    %22 = vector.broadcast %cst_6 : f32 to vector<24x128xf32>
    %23 = arith.addf %19, %22 : vector<24x128xf32>
    %24 = math.log %23 : vector<24x128xf32>
    %cst_7 = arith.constant 9.99999993E-9 : f32
    %25 = vector.broadcast %cst_7 : f32 to vector<24x128xf32>
    %26 = arith.addf %15, %25 : vector<24x128xf32>
    %27 = math.log %26 : vector<24x128xf32>
    %28 = arith.subf %24, %27 : vector<24x128xf32>
    %29 = math.absf %28 : vector<24x128xf32>
    %cst_8 = arith.constant 1.44269502 : f32
    %30 = vector.broadcast %cst_8 : f32 to vector<24x128xf32>
    %31 = arith.mulf %29, %30 : vector<24x128xf32>
    %c0_9 = arith.constant 0 : index
    %c0_10 = arith.constant 0 : index
    %c0_11 = arith.constant 0 : index
    %32 = vector.load %arg5[%c0_9, %c0_10, %c0_11] : memref<1x16x128xf32, #tpu.memory_space<vmem>>, vector<1x8x128xf32>
    %33 = vector.shape_cast %32 : vector<1x8x128xf32> to vector<8x128xf32>
    %34 = vector.shape_cast %21 : vector<24x128xf32> to vector<3x8x128xf32>
    %cst_12 = arith.constant dense<0.000000e+00> : vector<8x128xf32>
    %35 = vector.multi_reduction <add>, %34, %cst_12 [0] : vector<3x8x128xf32> to vector<8x128xf32>
    %36 = arith.addf %33, %35 : vector<8x128xf32>
    %c0_13 = arith.constant 0 : index
    %c0_14 = arith.constant 0 : index
    %c0_15 = arith.constant 0 : index
    %37 = vector.load %arg5[%c0_13, %c0_14, %c0_15] : memref<1x16x128xf32, #tpu.memory_space<vmem>>, vector<1x8x128xf32>
    %38 = vector.shape_cast %37 : vector<1x8x128xf32> to vector<8x128xf32>
    %39 = vector.shape_cast %36 : vector<8x128xf32> to vector<1x8x128xf32>
    tpu.vector_store %arg5[%c0_13, %c0_14, %c0_15], %39 {strides = array<i32>} : memref<1x16x128xf32, #tpu.memory_space<vmem>>, vector<1x8x128xf32>,
    %c0_16 = arith.constant 0 : index
    %c8 = arith.constant 8 : index
    %c0_17 = arith.constant 0 : index
    %40 = vector.load %arg5[%c0_16, %c8, %c0_17] : memref<1x16x128xf32, #tpu.memory_space<vmem>>, vector<1x8x128xf32>
    %41 = vector.shape_cast %40 : vector<1x8x128xf32> to vector<8x128xf32>
    %42 = vector.shape_cast %31 : vector<24x128xf32> to vector<3x8x128xf32>
    %cst_18 = arith.constant dense<0.000000e+00> : vector<8x128xf32>
    %43 = vector.multi_reduction <add>, %42, %cst_18 [0] : vector<3x8x128xf32> to vector<8x128xf32>
    %44 = arith.addf %41, %43 : vector<8x128xf32>
    %c0_19 = arith.constant 0 : index
    %c8_20 = arith.constant 8 : index
    %c0_21 = arith.constant 0 : index
    %45 = vector.load %arg5[%c0_19, %c8_20, %c0_21] : memref<1x16x128xf32, #tpu.memory_space<vmem>>, vector<1x8x128xf32>
    %46 = vector.shape_cast %45 : vector<1x8x128xf32> to vector<8x128xf32>
    %47 = vector.shape_cast %44 : vector<8x128xf32> to vector<1x8x128xf32>
    tpu.vector_store %arg5[%c0_19, %c8_20, %c0_21], %47 {strides = array<i32>} : memref<1x16x128xf32, #tpu.memory_space<vmem>>, vector<1x8x128xf32>,
    return
  }
  func.func @transform_0(%arg0: i32, %arg1: i32) -> (i32, i32) {
    %c1_i32 = arith.constant 1 : i32
    %0 = arith.muli %arg0, %c1_i32 : i32
    %1 = arith.addi %0, %arg1 : i32
    %c0_i32 = arith.constant 0 : i32
    %c0_i32_0 = arith.constant 0 : i32
    return %1, %c0_i32 : i32, i32
  }
  func.func @transform_1(%arg0: i32, %arg1: i32) -> (i32, i32) {
    %c1_i32 = arith.constant 1 : i32
    %0 = arith.muli %arg0, %c1_i32 : i32
    %1 = arith.addi %0, %arg1 : i32
    %c0_i32 = arith.constant 0 : i32
    %c0_i32_0 = arith.constant 0 : i32
    return %1, %c0_i32 : i32, i32
  }
  func.func @transform_2(%arg0: i32, %arg1: i32) -> (i32, i32) {
    %c0_i32 = arith.constant 0 : i32
    %c0_i32_0 = arith.constant 0 : i32
    %c0_i32_1 = arith.constant 0 : i32
    return %c0_i32, %c0_i32_0 : i32, i32
  }
  func.func @transform_3(%arg0: i32, %arg1: i32) -> (i32, i32, i32) {
    %c0_i32 = arith.constant 0 : i32
    %c0_i32_0 = arith.constant 0 : i32
    %c0_i32_1 = arith.constant 0 : i32
    return %arg0, %c0_i32, %c0_i32_0 : i32, i32, i32
  }
}

</mosaic_0001>

<bundles_post_ra>
// kernel: tpu_custom_call.1
= control target key start
LH: loop header
LB: loop body
LE: loop exit
PB: predicated region body
PF: predicated region fallthrough
CT: control target
= control target key end

     0   :  { %s1215_s0 = inlined_call_operand.hbm [shape: f32[48,64], index: 0, kind: input, shape index: {}]   ;;  %s1216_s1 = inlined_call_operand.hbm [shape: f32[48,64], index: 1, kind: input, shape index: {}]   ;;  %s1217_s2 = inlined_call_operand.hbm [shape: f32[64,256], index: 2, kind: input, shape index: {}]   ;;  %s1218_s3 = inlined_call_operand.hbm [shape: f32[2,16,128], index: 3, kind: output, shape index: {}]  }
   0x1   :  { %1221 = sst [smem:[#allocation16_spill]] %s1215_s0 }
   0x2   :  { %1222 = sst [smem:[#allocation17_spill]] %s1217_s2 }
   0x3   :  { %8 = vsyncpa [#allocation3], 0 }
   0x4   :  { %10 = vsyncpa [#allocation3 + $0x1], 0 }
   0x5   :  { %11 = vsyncpa [#allocation6], 0 }
   0x6   :  { %13 = vsyncpa [#allocation6 + $0x1], 0 }
   0x7   :  { %14 = vsyncpa [#allocation4], 0 }
   0x8   :  { %16 = vsyncpa [#allocation4 + $0x1], 0  ;;  %s1000_s12 = smov 0   ;;  %s1002_s13 = smov 0  }
   0x9   :  { %s1004_s14 = smov 0   ;;  %s1006_s15 = smov 0  }
   0xa   :  { %s1008_s16 = smov 0   ;;  %s1010_s17 = smov 0  }
   0xb LB: > { %1223 = sst [smem:[#allocation13_spill]] %s955_s14  ;;  %s1031_s18 = sadd.s32 4294967295, %s967_s17   ;;  %s967_s17 = sphi %s1010_s17, %s22_s17   ;;  %s963_s16 = sphi %s1008_s16, %s1242_s16   ;;  %s959_s15 = sphi %s1006_s15, %s1241_s15   ;;  %s955_s14 = sphi %s1004_s14, %s1237_s14   ;;  %s951_s13 = sphi %s1002_s13, %s1240_s13   ;;  %s947_s12 = sphi %s1000_s12, %s1239_s12  }
   0xc   : > { %s646_s19 = sadd.s32 4294967294, %s967_s17   ;;  %p56_p0 = scmp.ne.s32.totalorder %s951_s13, %s947_s12 }
   0xd   : > { %p57_p1 = scmp.eq.s32.totalorder %s1031_s18, 0  ;;  %p135_p3 = scmp.eq.s32.totalorder %s646_s19, 1 }
   0xe   : > { %p647_p5 = scmp.ge.s32.totalorder %s967_s17, 1  ;;  %p142_p7 = scmp.lt.s32.totalorder %s967_s17, 3 }
   0xf   : > { %p1040_p4 = por %p57_p1, %p56_p0  ;;  %p1045_p6 = por %p135_p3, %p56_p0 }
  0x10   : > { %p1050_p8 = pnand %p647_p5, %p142_p7  ;;  %s969_s23 = smov [#allocation7]  }
  0x11   : > { %s1225_s21 = scalar_select %p1045_p6, 1, 0 }
  0x12   : > { %s154_s24 = sshll.u32 %s969_s23, 4  ;;  %p698_p9 = pneg %p1050_p8  ;;  %s155_s24 = int_to_ptr.vmem [resolvable:$true] %s154_s24 }
  0x13   : > { %p649_p10 = scmp.ge.s32.totalorder %s967_s17, 2  ;;  %s34_s26 = sadd.s32 1, %s963_s16 }
  0x14   : > { %p1059_p11 = pnand %p698_p9, %p57_p1  ;;  %s808_s27 = scalar_lea.vmem %s155_s24, 2048 }
  0x15   : > { %p809_p13 = scmp.ne.s32.totalorder %s155_s24, %s808_s27  ;;  %p816_p5 = scmp.lt.s32.totalorder %s155_s24, %s155_s24 }
  0x16   : > { %p799_p12 = pneg %p1059_p11  ;;  %p817_p7 = scmp.lt.s32.totalorder %s808_s27, %s808_s27 }
  0x18   : > { %p811_p0 = pnand %p809_p13, %p799_p12  ;;  %p818_p2 = por %p817_p7, %p816_p5 }
  0x1a   : > { %p812_p3 = pneg %p811_p0 }
  0x1c   : > { %p819_p6 = pnand %p818_p2, %p812_p3 }
  0x1e   : > { %822 = shalt.err (!%p819_p6)
}
  0x1f   : > { %s970_s28 = smov 256   ;;  %s971_s29 = smov 16  }
  0x20   : > { %s1228_s2 = sld [smem:[#allocation17_spill]]  ;;  %p36_p2 = scmp.ge.s32.totalorder %s34_s26, 2 }
  0x21   : > { %s43_s5 = sadd.s32 1, %s955_s14  ;;  %p50_p6 = scmp.ne.s32.totalorder %s955_s14, %s951_s13 }
  0x22   : > { %p51_p9 = scmp.eq.s32.totalorder %s967_s17, 0  ;;  %s1244_s26 = smov (%p36_p2, %s34_s26), 0 }
  0x23   : > { %1229 = sst [smem:[#allocation14_spill]] %s1244_s26  ;;  %p1230_p13 = scmp.eq.s32.totalorder %s1031_s18, 1 }
  0x24   : > { %p52_p12 = por %p51_p9, %p50_p6  ;;  %s40_s7 = ssub.s32 %s963_s16, %s1244_s26 }
  0x25   : > { %p1079_p0 = por %p1230_p13, %p50_p6  ;;  %p714_p3 = scmp.lt.s32.totalorder %s967_s17, 2 }
  0x26   : > { %701 = dma.hbm_to_vmem [thread:$0]  (!%p1059_p11), %s1228_s2, 2048, %s155_s24, [#allocation6], %s970_s28, %s970_s28, %s971_s29  }
  0x27   : > { %p41_p5 = scmp.eq.s32.totalorder %s40_s7, 0  ;;  %s168_s8 = sand.u32 1, %s955_s14  }
  0x28   : > { %s1087_s9 = smul.u32 24, %s168_s8  ;;  %p1094_p11 = pnand %p714_p3, %p52_p12 }
  0x29   : > { %s1090_s10 = scalar_select %p41_p5, %s955_s14, %s43_s5  }
  0x2a   : > { %s666_s11 = smul.u32 384, %s963_s16  ;;  %s172_s19 = scalar_lea.vmem [#allocation2], %s1087_s9 }
  0x2b   : > { %1232 = sst [smem:[#allocation15_spill]] %s1090_s10  ;;  %s180_s23 = sshll.u32 %s172_s19, 4  ;;  %s181_s23 = int_to_ptr.vmem [resolvable:$true] %s180_s23 }
  0x2c   : > { %s1234_s0 = sld [smem:[#allocation16_spill]]  ;;  %s190_s29 = sand.u32 1, %s967_s17  }
  0x2d   : > { %s169_s30 = scalar_lea.sflag [#allocation3], %s168_s8  ;;  %p825_p7 = pneg %p1094_p11 }
  0x2e   : > { %s836_s4 = scalar_lea.vmem %s181_s23, 384  ;;  %s972_s5 = smov [#allocation2]  }
  0x2f   : > { %p837_p2 = scmp.ne.s32.totalorder %s181_s23, %s836_s4  ;;  %s841_s7 = sshll.u32 %s972_s5, 4  ;;  %s842_s7 = int_to_ptr.vmem [resolvable:$false] %s841_s7 }
  0x30   : > { %s843_s19 = scalar_lea.vmem %s842_s7, 768  ;;  %p844_p12 = scmp.lt.s32.totalorder %s181_s23, %s842_s7 }
  0x31   : > { %p839_p6 = pnand %p837_p2, %p825_p7  ;;  %p845_p13 = scmp.lt.s32.totalorder %s843_s19, %s836_s4 }
  0x32   : > { %s179_s28 = scalar_lea.hbm %s1234_s0, %s666_s11 }
  0x33   : > { %p840_p9 = pneg %p839_p6  ;;  %p846_p3 = por %p845_p13, %p844_p12 }
  0x35   : > { %p847_p5 = pnand %p846_p3, %p840_p9 }
  0x37   : > { %850 = shalt.err (!%p847_p5)
}
  0x38   : > { %s973_s25 = smov 128   ;;  %s974_s8 = smov 8  }
  0x39   : > { %705 = dma.hbm_to_vmem [thread:$0]  (!%p1094_p11), %s179_s28, 384, %s181_s23, %s169_s30, %s973_s25, %s973_s25, %s974_s8  }
  0x3a   : > { %s201_s5 = scalar_lea.hbm %s1216_s1, %s666_s11  ;;  %s194_s2 = scalar_lea.vmem [#allocation5], %s1087_s9 }
  0x3b   : > { %s202_s26 = sshll.u32 %s194_s2, 4  ;;  %s191_s4 = scalar_lea.sflag [#allocation6], %s190_s29  ;;  %s203_s26 = int_to_ptr.vmem [resolvable:$true] %s202_s26 }
  0x3c   : > { %s864_s7 = scalar_lea.vmem %s203_s26, 384  ;;  %s975_s19 = smov [#allocation5]  }
  0x3d   : > { %p865_p2 = scmp.ne.s32.totalorder %s203_s26, %s864_s7  ;;  %s869_s10 = sshll.u32 %s975_s19, 4  ;;  %s870_s10 = int_to_ptr.vmem [resolvable:$false] %s869_s10 }
  0x3e   : > { %s871_s14 = scalar_lea.vmem %s870_s10, 768  ;;  %p872_p12 = scmp.lt.s32.totalorder %s203_s26, %s870_s10 }
  0x3f   : > { %p867_p6 = pnand %p865_p2, %p825_p7  ;;  %p873_p13 = scmp.lt.s32.totalorder %s871_s14, %s864_s7 }
  0x41   : > { %p868_p9 = pneg %p867_p6  ;;  %p874_p3 = por %p873_p13, %p872_p12 }
  0x43   : > { %p875_p5 = pnand %p874_p3, %p868_p9 }
  0x45   : > { %878 = shalt.err (!%p875_p5)
}
  0x46   : > { %708 = dma.hbm_to_vmem [thread:$0]  (!%p1094_p11), %s201_s5, 384, %s203_s26, %s191_s4, %s973_s25, %s973_s25, %s974_s8  }
  0x47   : > { %214 = sbr.rel (%p1050_p8) target bundleno = 366 (0x16e), region = 32  ;;  %s1125_s0 = sand.u32 (!%p1050_p8), 1, %s951_s13  }
  0x48   : > { %s687_s2 = smul.u32 (!%p1050_p8), 24, %s1125_s0  ;;  %s217_s9 = scalar_lea.sflag (!%p1050_p8), [#allocation3], %s1125_s0 }
  0x4a   : > { %s1129_s11 = scalar_lea.vmem (!%p1050_p8), [#allocation2], %s687_s2 }
  0x4c   : > { %930 = dma.done.wait (%p1040_p4), %s217_s9, 384  }
  0x4d   : > { %932 = vsyncadd (%p1040_p4), %s217_s9, 4294966912  ;;  %s225_s14 = sand.u32 1, %s1031_s18   ;;  %s1136_s26 = scalar_lea.vmem [#allocation5], %s687_s2 }
  0x4e   : > { %s226_s22 = scalar_lea.sflag [#allocation6], %s225_s14 }
  0x4f   : > { %934 = dma.done.wait (%p1040_p4), %s226_s22, 384  }
  0x50   : > { %936 = vsyncadd (%p1040_p4), %s226_s22, 4294966912 }
  0x51   : > { %938 = dma.done.wait (%p57_p1), [#allocation6], 2048  }
  0x52   : > { %940 = vsyncadd (%p57_p1), [#allocation6], 4294965248  ;;  %v976_v0 = vmov 0.0   ;;  %v292_v1 = vld [vmem:[#allocation7 + $0x78] sm:$0xff]  ;;  %v291_v2 = vld [vmem:[#allocation7 + $0x70] sm:$0xff]  ;;  %vm293_vm0 = vcmask 523264  }
  0x53   : > { %376 = vmatprep.mubr.f32.mxu0 %v976_v0  ;;  %394 = vmatprep.mubr.f32.mxu1 %v976_v0  ;;  %v290_v3 = vld [vmem:[#allocation7 + $0x68] sm:$0xff]  ;;  %v289_v4 = vld [vmem:[#allocation7 + $0x60] sm:$0xff]  ;;  %v288_v5 = vld [vmem:[#allocation7 + $0x58] sm:$0xff]  ;;  %s654_s18 = sshll.u32 %s1125_s0, 4  ;;  %s668_s10 = sshll.u32 %s959_s15, 8 }
  0x54   : > { %328 = vmatprep.subr.mxu0 %v292_v1  ;;  %669 = vmatprep.subr.mxu1 %v292_v1  ;;  %v287_v6 = vld [vmem:[#allocation7 + $0x50] sm:$0xff]  ;;  %v286_v7 = vld [vmem:[#allocation7 + $0x48] sm:$0xff]  ;;  %v285_v8 = vld [vmem:[#allocation7 + $0x40] sm:$0xff]  ;;  %s260_s20 = scalar_lea.vmem [#allocation8], %s654_s18  ;;  %s1165_s29 = scalar_lea.hbm %s1218_s3, %s668_s10 }
  0x55   : > { %329 = vmatpush1.msra.mxu0 %v291_v2  ;;  %677 = vmatpush1.msra.mxu1 %v291_v2  ;;  %v284_v9 = vld [vmem:[#allocation7 + $0x38] sm:$0xff]  ;;  %v283_v10 = vld [vmem:[#allocation7 + $0x30] sm:$0xff]  ;;  %v282_v11 = vld [vmem:[#allocation7 + $0x28] sm:$0xff]  ;;  %s530_s23 = sshll.u32 %s260_s20, 4  ;;  %s517_s30 = scalar_lea.sflag [#allocation4], %s1125_s0  ;;  %s1167_s23 = int_to_ptr.vmem [resolvable:$true] %s530_s23 }
  0x56   : > { %330 = vmatprep.subr.mxu0 %v290_v3  ;;  %670 = vmatprep.subr.mxu1 %v290_v3  ;;  %v281_v12 = vld [vmem:[#allocation7 + $0x20] sm:$0xff]  ;;  %v280_v13 = vld [vmem:[#allocation7 + $0x18] sm:$0xff]  ;;  %v279_v14 = vld [vmem:[#allocation7 + $0x10] sm:$0xff]  ;;  %s879_s25 = scalar_lea.vmem %s1167_s23, 256  ;;  %s977_s15 = smov [#allocation8]  }
  0x57   : > { %331 = vmatpush1.msra.mxu0 %v289_v4  ;;  %678 = vmatpush1.msra.mxu1 %v289_v4  ;;  %v278_v15 = vld [vmem:[#allocation7 + $0x8] sm:$0xff]  ;;  %v277_v16 = vld [vmem:[#allocation7] sm:$0xff]  ;;  %v275_v20 = vld [vmem:[%s1136_s26 + $0x8] sm:$0xff]  ;;  %p880_p1 = scmp.ne.s32.totalorder %s1167_s23, %s879_s25  ;;  %s883_s8 = sshll.u32 %s977_s15, 4  ;;  %s884_s8 = int_to_ptr.vmem [resolvable:$false] %s883_s8 }
  0x58   : > { %332 = vmatprep.subr.mxu0 %v288_v5  ;;  %671 = vmatprep.subr.mxu1 %v288_v5  ;;  %v271_v17 = vld [vmem:[%s1129_s11] sm:$0xff]  ;;  %v274_v18 = vld [vmem:[%s1136_s26] sm:$0xff]  ;;  %v272_v19 = vld [vmem:[%s1129_s11 + $0x8] sm:$0xff]  ;;  %s885_s27 = scalar_lea.vmem %s884_s8, 512  ;;  %p886_p11 = scmp.lt.s32.totalorder %s1167_s23, %s884_s8 }
  0x59   : > { %333 = vmatpush1.msra.mxu0 %v287_v6  ;;  %679 = vmatpush1.msra.mxu1 %v287_v6  ;;  %v273_v21 = vld [vmem:[%s1129_s11 + $0x10] sm:$0xff]  ;;  %v276_v22 = vld [vmem:[%s1136_s26 + $0x10] sm:$0xff]  ;;  %p881_p4 = pnand %p880_p1, %p1079_p0  ;;  %p887_p7 = scmp.lt.s32.totalorder %s885_s27, %s879_s25 }
  0x5a   : > { %334 = vmatprep.subr.mxu0 %v286_v7  ;;  %672 = vmatprep.subr.mxu1 %v286_v7 }
  0x5b   : > { %335 = vmatpush1.msra.mxu0 %v285_v8  ;;  %680 = vmatpush1.msra.mxu1 %v285_v8  ;;  %p882_p8 = pneg %p881_p4  ;;  %p888_p2 = por %p887_p7, %p886_p11 }
  0x5c   : > { %336 = vmatprep.subr.mxu0 %v284_v9  ;;  %673 = vmatprep.subr.mxu1 %v284_v9 }
  0x5d   : > { %337 = vmatpush1.msra.mxu0 %v283_v10  ;;  %681 = vmatpush1.msra.mxu1 %v283_v10  ;;  %p889_p6 = pnand %p888_p2, %p882_p8 }
  0x5e   : > { %338 = vmatprep.subr.mxu0 %v282_v11  ;;  %674 = vmatprep.subr.mxu1 %v282_v11 }
  0x5f   : > { %339 = vmatpush1.msra.mxu0 %v281_v12  ;;  %682 = vmatpush1.msra.mxu1 %v281_v12 }
  0x60   : > { %340 = vmatprep.subr.mxu0 %v280_v13  ;;  %675 = vmatprep.subr.mxu1 %v280_v13 }
  0x61   : > { %341 = vmatpush1.msra.mxu0 %v279_v14  ;;  %683 = vmatpush1.msra.mxu1 %v279_v14 }
  0x62   : > { %342 = vmatprep.subr.mxu0 %v278_v15  ;;  %676 = vmatprep.subr.mxu1 %v278_v15 }
  0x63   : > { %343 = vmatpush1.msra.mxu0 %v277_v16  ;;  %684 = vmatpush1.msra.mxu1 %v277_v16 }
  0x64   : > { %655 = vmatmul.mubr.msk.f32.vlgmr.msra.gmra.mxu0 %vm293_vm0, %v271_v17  ;;  %658 = vmatmul.mubr.msk.f32.vlgmr.msra.gmra.mxu1 %vm293_vm0, %v274_v18 }
  0x65   : > { %382 = vmatprep.mubr.f32.mxu0 %v976_v0  ;;  %400 = vmatprep.mubr.f32.mxu1 %v976_v0 }
  0x68   : > { %656 = vmatmul.mubr.msk.f32.gmra.mxu0 %vm293_vm0, %v272_v19  ;;  %659 = vmatmul.mubr.msk.f32.gmra.mxu1 %vm293_vm0, %v275_v20 }
  0x69   : > { %388 = vmatprep.mubr.f32.mxu0 %v976_v0  ;;  %406 = vmatprep.mubr.f32.mxu1 %v976_v0 }
  0x6c   : > { %657 = vmatmul.mubr.msk.f32.gmra.mxu0 %vm293_vm0, %v273_v21  ;;  %660 = vmatmul.mubr.msk.f32.gmra.mxu1 %vm293_vm0, %v276_v22 }
 0x124   : > { %v378_v23 = vpop.f32.mrf.mxu0  ;;  %v396_v24 = vpop.f32.mrf.mxu1 }
 0x125   : > { %v413_v27 = vmul.f32 %v378_v23, %v378_v23  ;;  %v443_v28 = vmul.f32 %v396_v24, %v396_v24 }
 0x126   : > { %v380_v25 = vpop.f32.mrf.mxu0  ;;  %v398_v26 = vpop.f32.mrf.mxu1 }
 0x127   : > { %v416_v29 = vmul.f32 %v380_v25, %v380_v25  ;;  %v446_v30 = vmul.f32 %v398_v26, %v398_v26 }
 0x128   : > { %v384_v31 = vpop.f32.mrf.mxu0  ;;  %v402_v32 = vpop.f32.mrf.mxu1 }
 0x129   : > { %v419_v33 = vadd.f32 %v416_v29, %v413_v27  ;;  %v449_v34 = vadd.f32 %v446_v30, %v443_v28  ;;  %v414_v39 = vmul.f32 %v384_v31, %v384_v31  ;;  %v444_v40 = vmul.f32 %v402_v32, %v402_v32 }
 0x12a   : > { %v386_v35 = vpop.f32.mrf.mxu0  ;;  %v404_v36 = vpop.f32.mrf.mxu1 }
 0x12b   : > { %773 = vrsqrt.f32 %v419_v33  ;;  %v417_v41 = vmul.f32 %v386_v35, %v386_v35  ;;  %v447_v42 = vmul.f32 %v404_v36, %v404_v36  ;;  %vm424_vm1 = vcmp.eq.f32.partialorder %v419_v33, inf }
 0x12c   : > { %775 = vrsqrt.f32 %v449_v34  ;;  %v390_v37 = vpop.f32.mrf.mxu0  ;;  %v408_v38 = vpop.f32.mrf.mxu1  ;;  %v427_v56 = vand.u32 2147483648, %v419_v33  ;;  %vm426_vm2 = vcmp.eq.f32.partialorder %v419_v33, 0.0  ;;  %vm454_vm3 = vcmp.eq.f32.partialorder %v449_v34, inf }
 0x12d   : > { %v420_v45 = vadd.f32 %v417_v41, %v414_v39  ;;  %v450_v46 = vadd.f32 %v447_v42, %v444_v40  ;;  %v415_v49 = vmul.f32 %v390_v37, %v390_v37  ;;  %v445_v50 = vmul.f32 %v408_v38, %v408_v38 }
 0x12e   : > { %v392_v43 = vpop.f32.mrf.mxu0  ;;  %v410_v44 = vpop.f32.mrf.mxu1  ;;  %v457_v59 = vand.u32 2147483648, %v449_v34  ;;  %vm456_vm4 = vcmp.eq.f32.partialorder %v449_v34, 0.0 }
 0x12f   : > { %v418_v47 = vmul.f32 %v392_v43, %v392_v43  ;;  %v448_v48 = vmul.f32 %v410_v44, %v410_v44  ;;  %777 = vrsqrt.f32 %v420_v45  ;;  %vm431_vm5 = vcmp.eq.f32.partialorder %v420_v45, inf }
 0x130   : > { %779 = vrsqrt.f32 %v450_v46  ;;  %vm433_vm6 = vcmp.eq.f32.partialorder %v420_v45, 0.0  ;;  %v434_v4 = vand.u32 2147483648, %v420_v45  ;;  %vm461_vm7 = vcmp.eq.f32.partialorder %v450_v46, inf }
 0x131   : > { %v421_v51 = vadd.f32 %v418_v47, %v415_v49  ;;  %v451_v52 = vadd.f32 %v448_v48, %v445_v50  ;;  %vm463_vm8 = vcmp.eq.f32.partialorder %v450_v46, 0.0  ;;  %v464_v7 = vand.u32 2147483648, %v450_v46 }
 0x133   : > { %781 = vrsqrt.f32 %v421_v51  ;;  %vm438_vm9 = vcmp.eq.f32.partialorder %v421_v51, inf  ;;  %vm440_vm10 = vcmp.eq.f32.partialorder %v421_v51, 0.0  ;;  %v441_v11 = vand.u32 2147483648, %v421_v51 }
 0x134   : > { %783 = vrsqrt.f32 %v451_v52  ;;  %vm468_vm11 = vcmp.eq.f32.partialorder %v451_v52, inf  ;;  %vm470_vm12 = vcmp.eq.f32.partialorder %v451_v52, 0.0  ;;  %v471_v21 = vand.u32 2147483648, %v451_v52 }
 0x138   : > { %v774_v53 = vpop.eup %773 }
 0x139   : > { %v776_v54 = vpop.eup %775  ;;  %v423_v55 = vmul.f32 %v774_v53, %v419_v33 }
 0x13a   : > { %v453_v57 = vmul.f32 %v776_v54, %v449_v34 }
 0x13b   : > { %v425_v58 = vsel %vm424_vm1, %v419_v33, %v423_v55 }
 0x13c   : > { %v428_v60 = vsel %vm426_vm2, %v427_v56, %v425_v58  ;;  %v455_v61 = vsel %vm454_vm3, %v449_v34, %v453_v57  ;;  %v778_v0 = vpop.eup %777 }
 0x13d   : > { %v488_v62 = vadd.f32 1e-08, %v428_v60  ;;  %v458_v63 = vsel %vm456_vm4, %v457_v59, %v455_v61  ;;  %v780_v2 = vpop.eup %779  ;;  %v430_v3 = vmul.f32 %v778_v0, %v420_v45 }
 0x13e   : > { %v479_v1 = vadd.f32 1e-08, %v458_v63  ;;  %v460_v5 = vmul.f32 %v780_v2, %v450_v46  ;;  %v473_v16 = vsub.f32 %v428_v60, %v458_v63 }
 0x13f   : > { %785 = vlog2.f32 %v488_v62  ;;  %v432_v6 = vsel %vm431_vm5, %v420_v45, %v430_v3 }
 0x140   : > { %787 = vlog2.f32 %v479_v1  ;;  %v782_v8 = vpop.eup %781  ;;  %v435_v9 = vsel %vm433_vm6, %v434_v4, %v432_v6  ;;  %v462_v10 = vsel %vm461_vm7, %v450_v46, %v460_v5  ;;  %v476_v27 = vand.u32 2147483647, %v473_v16 }
 0x141   : > { %v784_v12 = vpop.eup %783  ;;  %v489_v13 = vadd.f32 1e-08, %v435_v9  ;;  %v465_v14 = vsel %vm463_vm8, %v464_v7, %v462_v10  ;;  %v437_v15 = vmul.f32 %v782_v8, %v421_v51 }
 0x142   : > { %v474_v17 = vsub.f32 %v435_v9, %v465_v14  ;;  %v480_v18 = vadd.f32 1e-08, %v465_v14  ;;  %v467_v19 = vmul.f32 %v784_v12, %v451_v52 }
 0x143   : > { %789 = vlog2.f32 %v489_v13  ;;  %v439_v20 = vsel %vm438_vm9, %v421_v51, %v437_v15 }
 0x144   : > { %v477_v22 = vand.u32 2147483647, %v474_v17  ;;  %791 = vlog2.f32 %v480_v18  ;;  %v442_v23 = vsel %vm440_vm10, %v441_v11, %v439_v20  ;;  %v469_v24 = vsel %vm468_vm11, %v451_v52, %v467_v19 }
 0x145   : > { %v490_v25 = vadd.f32 1e-08, %v442_v23  ;;  %v472_v26 = vsel %vm470_vm12, %v471_v21, %v469_v24 }
 0x146   : > { %v475_v28 = vsub.f32 %v442_v23, %v472_v26  ;;  %v481_v29 = vadd.f32 1e-08, %v472_v26  ;;  %v507_v30 = vadd.f32 %v477_v22, %v476_v27 }
 0x147   : > { %793 = vlog2.f32 %v490_v25 }
 0x148   : > { %v478_v31 = vand.u32 2147483647, %v475_v28  ;;  %795 = vlog2.f32 %v481_v29 }
 0x14a   : > { %v508_v33 = vadd.f32 %v507_v30, %v478_v31 }
 0x14c   : > { %v786_v32 = vpop.eup %785  ;;  %510 = vst [vmem:[%s260_s20] sm:$0xff] %v508_v33 }
 0x14d   : > { %v788_v34 = vpop.eup %787  ;;  %v492_v35 = vmul.f32 0.6931472, %v786_v32 }
 0x14e   : > { %v483_v36 = vmul.f32 0.6931472, %v788_v34 }
 0x150   : > { %v790_v37 = vpop.eup %789  ;;  %v497_v41 = vsub.f32 %v483_v36, %v492_v35 }
 0x151   : > { %v792_v38 = vpop.eup %791  ;;  %v494_v39 = vmul.f32 0.6931472, %v790_v37 }
 0x152   : > { %v485_v40 = vmul.f32 0.6931472, %v792_v38  ;;  %v500_v47 = vand.u32 2147483647, %v497_v41 }
 0x154   : > { %v794_v42 = vpop.eup %793  ;;  %v498_v43 = vsub.f32 %v485_v40, %v494_v39  ;;  %v503_v52 = vmul.f32 1.442695, %v500_v47 }
 0x155   : > { %v796_v44 = vpop.eup %795  ;;  %v496_v45 = vmul.f32 0.6931472, %v794_v42 }
 0x156   : > { %v487_v46 = vmul.f32 0.6931472, %v796_v44  ;;  %v501_v48 = vand.u32 2147483647, %v498_v43 }
 0x158   : > { %v499_v49 = vsub.f32 %v487_v46, %v496_v45  ;;  %v504_v50 = vmul.f32 1.442695, %v501_v48 }
 0x15a   : > { %v502_v51 = vand.u32 2147483647, %v499_v49  ;;  %v512_v54 = vadd.f32 %v504_v50, %v503_v52 }
 0x15c   : > { %v505_v53 = vmul.f32 1.442695, %v502_v51 }
 0x15e   : > { %v513_v55 = vadd.f32 %v512_v54, %v505_v53 }
 0x160   : > { %515 = vst [vmem:[%s260_s20 + $0x8] sm:$0xff] %v513_v55 }
 0x161   : > { %892 = shalt.err (!%p889_p6)
}
 0x162   : > { %s893_s5 = scalar_lea.hbm %s1165_s29, 256  ;;  %s897_s19 = scalar_lea.hbm %s1218_s3, 512 }
 0x163   : > { %p894_p9 = scmp.ne.s32.totalorder %s1165_s29, %s893_s5  ;;  %p898_p3 = scmp.lt.s32.totalorder %s1165_s29, %s1218_s3 }
 0x164   : > { %p899_p5 = scmp.lt.s32.totalorder %s897_s19, %s893_s5 }
 0x165   : > { %p895_p12 = pnand %p894_p9, %p1079_p0 }
 0x166   : > { %p900_p1 = por %p899_p5, %p898_p3 }
 0x167   : > { %p896_p13 = pneg %p895_p12 }
 0x169   : > { %p901_p4 = pnand %p900_p1, %p896_p13 }
 0x16b   : > { %904 = shalt.err (!%p901_p4)
}
 0x16c   : > { %s978_s11 = smov 128   ;;  %s979_s14 = smov 8  }
 0x16d   : > { %696 = dma.vmem_to_hbm [thread:$0]  (%p1079_p0), %s1167_s23, 256, %s1165_s29, %s517_s30, %s978_s11, %s978_s11, %s979_s14  }
 0x16e PF: > { %s545_s22 = sand.u32 1, %s947_s12   ;;  %p1235_p8 = scmp.ne.s32.totalorder %s1225_s21, 0 }
 0x16f   : > { %s546_s26 = scalar_lea.sflag [#allocation4], %s545_s22 }
 0x170   : > { %p710_p11 = pnand %p649_p10, %p1235_p8 }
 0x172   : > { %p711_p7 = pneg %p710_p11 }
 0x174   : > { %942 = dma.done.wait (%p711_p7), %s546_s26, 256  }
 0x175   : > { %944 = vsyncadd (%p711_p7), %s546_s26, 4294967040  ;;  %s22_s17 = sadd.s32 1, %s967_s17   ;;  %s1236_s18 = sld [smem:[#allocation13_spill]] }
 0x176   : > { %p19_p2 = scmp.ge.s32.totalorder %s22_s17, 4   ;;  %s1237_s14 = sld [smem:[#allocation15_spill]] }
 0x177   : > { %s1238_s6 = sld [smem:[#allocation14_spill]]  ;;  %s1239_s12 = smov %s951_s13 }
 0x178   : > { %s1241_s15 = smov %s963_s16 }
 0x179   :  { %21 = sbr.rel (!%p19_p2) target bundleno = 11 (0xb), region = 98 }
 0x17b   : > { %s1240_s13 = smov %s1236_s18 }
 0x17d   : > { %s1242_s16 = smov %s1238_s6 }
 0x17e   :  { %551 = vsyncpa [#allocation3], 1 }
 0x17f   :  { %553 = vsyncpa [#allocation3 + $0x1], 1 }
 0x180   :  { %554 = vsyncpa [#allocation6], 1 }
 0x181   :  { %556 = vsyncpa [#allocation6 + $0x1], 1 }
 0x182   :  { %557 = vsyncpa [#allocation4], 1 }
 0x183   :  { %559 = vsyncpa [#allocation4 + $0x1], 1 }

</bundles_post_ra>
